<compile_context>
chip_gen: v5e
topology: v5e:2x2
jax: 0.10.0
libtpu: 0.0.40
codegen_flags: <defaults>
</compile_context>

<pallas_src>
from functools import partial

import jax
import jax.numpy as jnp
from jax.experimental import pallas as pl
from jax.experimental.pallas import tpu as pltpu


def _round_up(x, m):
    return (x + m - 1) // m * m


def _fc_kernel(x_ref, w1_ref, b1_ref, w2_ref, b2_ref, w3_ref, b3_ref, out_ref, *, hc):
    x_f32 = x_ref[...]                         # (TM, D) f32 — exact input for the residual add
    x_bf = x_f32.astype(jnp.bfloat16)          # MXU operand

    # residual_block: Linear(D, 2D) -> ReLU -> (Dropout=id) -> Linear(2D, D), chunked over H
    # so the (TM, H) f32 intermediate never materializes and the two matmuls interleave.
    n_chunks = w1_ref.shape[1] // hc
    r = x_f32 + b2_ref[...]                    # residual + second-linear bias as accumulator init
    for c in range(n_chunks):                  # static trip count; static slices are views
        lo = c * hc
        h = jnp.dot(x_bf, w1_ref[:, lo:lo + hc],
                    preferred_element_type=jnp.float32) + b1_ref[:, lo:lo + hc]
        h = jnp.maximum(h, 0.0)
        r = r + jnp.dot(h.astype(jnp.bfloat16), w2_ref[lo:lo + hc, :],
                        preferred_element_type=jnp.float32)

    # post_process (BN eval, folded into w3/b3 at prep time) -> classifier: Linear(D, C)
    out_ref[...] = (jnp.dot(r.astype(jnp.bfloat16), w3_ref[...],
                            preferred_element_type=jnp.float32)
                    + b3_ref[...]).astype(out_ref.dtype)


def prepare_params(params):
    """One-time parameter prep: fold BN into the classifier, pad to lane multiples of 128,
    cast matmul weights to bf16 (biases stay f32). Call once, reuse across forward calls."""
    D, H = params["w1"].shape
    C = params["w3"].shape[1]
    D_pad, H_pad, C_pad = (_round_up(n, 128) for n in (D, H, C))

    bn_s = params["bn_scale"].reshape(-1)
    bn_b = params["bn_bias"].reshape(-1)
    w3f = params["w3"] * bn_s[:, None]                              # fold BN scale into W3 rows
    b3f = params["b3"].reshape(1, -1) + bn_b[None, :] @ params["w3"]  # fold BN bias into b3

    def pad2(a, r, c):
        return jnp.pad(a, ((0, r - a.shape[0]), (0, c - a.shape[1])))

    return dict(
        w1=pad2(params["w1"], D_pad, H_pad).astype(jnp.bfloat16),
        b1=pad2(params["b1"].reshape(1, -1), 1, H_pad).astype(jnp.float32),
        w2=pad2(params["w2"], H_pad, D_pad).astype(jnp.bfloat16),
        b2=pad2(params["b2"].reshape(1, -1), 1, D_pad).astype(jnp.float32),
        w3=pad2(w3f, D_pad, C_pad).astype(jnp.bfloat16),
        b3=pad2(b3f, 1, C_pad).astype(jnp.float32),
        dims=(int(D), int(H), int(C), int(D_pad), int(H_pad), int(C_pad)),
    )


def my_fully_connect(x, prep, *, out_dtype=jnp.float32):
    """x: (B, D) float32. prep: output of prepare_params. Returns (B, C) out_dtype."""
    B, D = x.shape
    D0, H0, C, D_pad, H_pad, C_pad = prep["dims"]
    assert D == D0, (D, D0)

    # Hidden-dim chunk size (multiple of 128, divides H_pad).
    if H_pad <= 512:
        HC = H_pad
    else:
        HC = 512
        while H_pad % HC:
            HC -= 128

    # Batch tile: >=4 tiles when possible (v7x megacore), cap 512, minimal padding waste.
    TM_CAP = 512
    n_tiles = max(4, pl.cdiv(B, TM_CAP))
    TM = min(TM_CAP, max(8, _round_up(pl.cdiv(B, n_tiles), 8)))

    # Generation-aware VMEM budget and true-footprint sizing.
    try:
        vmem_cap = int(pltpu.get_tpu_info().vmem_capacity_bytes)
    except Exception:
        vmem_cap = 64 * 1024 * 1024            # conservative (v7x per-TC) fallback
    budget = int(vmem_cap * 0.9)

    out_bytes = jnp.dtype(out_dtype).itemsize
    weight_bytes = 2 * (D_pad * H_pad + H_pad * D_pad + D_pad * C_pad)   # bf16, single-buffered
    vec_bytes = 4 * 8 * (H_pad + D_pad + C_pad)                          # (1,n) tiles -> 8 sublanes

    def footprint(tm):
        stream = 2 * tm * (D_pad * 4 + C_pad * out_bytes)                # 2x-buffered x / out tiles
        interm = 4 * tm * (HC + D_pad) + 2 * tm * (2 * D_pad + HC)       # f32 h,r + bf16 casts
        return weight_bytes + vec_bytes + stream + interm

    while TM > 8 and footprint(TM) > budget:
        TM = max(8, _round_up(TM // 2, 8))
    if footprint(TM) > budget:
        raise ValueError(
            f"Resident weights ({weight_bytes / 2**20:.1f} MiB) exceed the per-core VMEM budget "
            f"({budget / 2**20:.1f} MiB); add H-tiling of w1/w2 or reduce input_dim.")
    vmem_limit = int(min(max(footprint(TM) + (4 << 20), 32 << 20), budget))

    B_pad = _round_up(B, TM)
    grid = (B_pad // TM,)

    # Only x is padded per call (batch to TM multiple, feature dim to 128); weights come prepped.
    xp = jnp.pad(x.astype(jnp.float32), ((0, B_pad - B), (0, D_pad - D)))

    def resident(shape):                        # VMEM-resident, single-buffered constant operand
        return pl.BlockSpec(shape, lambda i: (0, 0), pipeline_mode=pl.Buffered(1))

    in_specs = [
        pl.BlockSpec((TM, D_pad), lambda i: (i, 0)),      # x streamed over batch tiles
        resident((D_pad, H_pad)), resident((1, H_pad)),   # w1, b1
        resident((H_pad, D_pad)), resident((1, D_pad)),   # w2, b2
        resident((D_pad, C_pad)), resident((1, C_pad)),   # w3 (BN-folded), b3 (BN-folded)
    ]
    out_specs = pl.BlockSpec((TM, C_pad), lambda i: (i, 0))

    flops = 2 * B_pad * (D_pad * H_pad + H_pad * D_pad + D_pad * C_pad)
    bytes_accessed = (weight_bytes + 4 * (H_pad + D_pad + C_pad)
                      + B_pad * D_pad * 4 + B_pad * C_pad * out_bytes)

    out = pl.pallas_call(
        partial(_fc_kernel, hc=HC),
        out_shape=jax.ShapeDtypeStruct((B_pad, C_pad), out_dtype),
        grid=grid,
        in_specs=in_specs,
        out_specs=out_specs,
        compiler_params=pltpu.CompilerParams(
            dimension_semantics=("parallel",),
            vmem_limit_bytes=vmem_limit),
        cost_estimate=pl.CostEstimate(flops=int(flops), transcendentals=0,
                                      bytes_accessed=int(bytes_accessed)),
    )(xp, prep["w1"], prep["b1"], prep["w2"], prep["b2"], prep["w3"], prep["b3"])

    return out[:B, :C]


def init_params(key, input_dim, output_dim):
    """Deterministic parameters matching the PyTorch module's shapes.
    PyTorch Linear stores weight as (out, in); we keep (in, out) for x @ W."""
    D, H, C = input_dim, input_dim * 2, output_dim
    ks = jax.random.split(key, 8)

    def lin(kw, kb, fan_in, fan_out):
        bound = 1.0 / jnp.sqrt(fan_in)
        w = jax.random.uniform(kw, (fan_in, fan_out), jnp.float32, -bound, bound)
        b = jax.random.uniform(kb, (1, fan_out), jnp.float32, -bound, bound)
        return w, b

    w1, b1 = lin(ks[0], ks[1], D, H)
    w2, b2 = lin(ks[2], ks[3], H, D)
    w3, b3 = lin(ks[4], ks[5], D, C)

    # BatchNorm1d defaults at init: gamma=1, beta=0, running_mean=0, running_var=1
    gamma = jnp.ones((D,), jnp.float32)
    beta = jnp.zeros((D,), jnp.float32)
    running_mean = jnp.zeros((D,), jnp.float32)
    running_var = jnp.ones((D,), jnp.float32)
    eps = 1e-5
    inv_std = 1.0 / jnp.sqrt(running_var + eps)
    bn_scale = (gamma * inv_std).reshape(1, D)
    bn_bias = (beta - gamma * running_mean * inv_std).reshape(1, D)

    return dict(w1=w1, b1=b1, w2=w2, b2=b2,
                bn_scale=bn_scale, bn_bias=bn_bias, w3=w3, b3=b3)


def reference(x, p):
    """Pure-JAX reference mirroring the kernel's bf16 rounding of MXU operands (f32 math;
    residual add uses the exact f32 x, matching the kernel)."""
    bf = lambda a: a.astype(jnp.bfloat16).astype(jnp.float32)
    h = jnp.maximum(bf(x) @ bf(p["w1"]) + p["b1"], 0.0)
    r = bf(h) @ bf(p["w2"]) + p["b2"] + x
    r = r * p["bn_scale"] + p["bn_bias"]
    return bf(r) @ bf(p["w3"]) + p["b3"]


if __name__ == "__main__":
    key = jax.random.PRNGKey(0)
    k_x, k_p = jax.random.split(key)

    B, D, C = 8, 32, 8
    x = jax.random.normal(k_x, (B, D), jnp.float32)
    params = init_params(k_p, D, C)
    prep = prepare_params(params)               # one-time weight prep (padded / bf16 / BN-folded)

    out = jax.block_until_ready(my_fully_connect(x, prep))

    ref = reference(x, params)
    assert out.shape == (B, C), out.shape
    err = float(jnp.max(jnp.abs(out - ref)))
    assert jnp.allclose(out, ref, atol=1e-2, rtol=1e-2), err

    print("KERNEL_OK")
</pallas_src>

<mosaic_0001>
module attributes {stable_mosaic.version = 11 : i64} {
  func.func @_fc_kernel(%arg0: i32, %arg1: memref<8x128xf32, #tpu.memory_space<vmem>>, %arg2: memref<128x128xbf16, #tpu.memory_space<vmem>>, %arg3: memref<1x128xf32, #tpu.memory_space<vmem>>, %arg4: memref<128x128xbf16, #tpu.memory_space<vmem>>, %arg5: memref<1x128xf32, #tpu.memory_space<vmem>>, %arg6: memref<128x128xbf16, #tpu.memory_space<vmem>>, %arg7: memref<1x128xf32, #tpu.memory_space<vmem>>, %arg8: memref<8x128xf32, #tpu.memory_space<vmem>>) attributes {dimension_semantics = [#tpu.dimension_semantics<parallel>], iteration_bounds = array<i64: 1>, scalar_prefetch = 0 : i64, scratch_operands = 0 : i64, tpu.core_type = #tpu.core_type<tc>, window_params = [{transform_indices = @transform_0, window_bounds = array<i64: 8, 128>}, {pipeline_mode = #tpu.pipeline_mode<synchronous>, transform_indices = @transform_1, window_bounds = array<i64: 128, 128>}, {pipeline_mode = #tpu.pipeline_mode<synchronous>, transform_indices = @transform_2, window_bounds = array<i64: 1, 128>}, {pipeline_mode = #tpu.pipeline_mode<synchronous>, transform_indices = @transform_3, window_bounds = array<i64: 128, 128>}, {pipeline_mode = #tpu.pipeline_mode<synchronous>, transform_indices = @transform_4, window_bounds = array<i64: 1, 128>}, {pipeline_mode = #tpu.pipeline_mode<synchronous>, transform_indices = @transform_5, window_bounds = array<i64: 128, 128>}, {pipeline_mode = #tpu.pipeline_mode<synchronous>, transform_indices = @transform_6, window_bounds = array<i64: 1, 128>}, {transform_indices = @transform_7, window_bounds = array<i64: 8, 128>}]} {
    %c0 = arith.constant 0 : index
    %c0_0 = arith.constant 0 : index
    %0 = vector.load %arg1[%c0, %c0_0] : memref<8x128xf32, #tpu.memory_space<vmem>>, vector<8x128xf32>
    %1 = arith.truncf %0 : vector<8x128xf32> to vector<8x128xbf16>
    %c0_1 = arith.constant 0 : index
    %c0_2 = arith.constant 0 : index
    %2 = vector.load %arg5[%c0_1, %c0_2] : memref<1x128xf32, #tpu.memory_space<vmem>>, vector<1x128xf32>
    %3 = vector.broadcast %2 : vector<1x128xf32> to vector<8x128xf32>
    %4 = arith.addf %0, %3 : vector<8x128xf32>
    %c0_3 = arith.constant 0 : index
    %c0_4 = arith.constant 0 : index
    %5 = vector.load %arg2[%c0_3, %c0_4] : memref<128x128xbf16, #tpu.memory_space<vmem>>, vector<128x128xbf16>
    %cst = arith.constant dense<0.000000e+00> : vector<8x128xf32>
    %6 = tpu.matmul %1, %5, %cst {dimension_numbers = #tpu.dot_dimension_numbers<[1], [0], [0], [1], [0, 0, 1, 1], [], []>} : vector<8x128xbf16>, vector<128x128xbf16>, vector<8x128xf32> -> vector<8x128xf32>
    %c0_5 = arith.constant 0 : index
    %c0_6 = arith.constant 0 : index
    %7 = vector.load %arg3[%c0_5, %c0_6] : memref<1x128xf32, #tpu.memory_space<vmem>>, vector<1x128xf32>
    %8 = vector.broadcast %7 : vector<1x128xf32> to vector<8x128xf32>
    %9 = arith.addf %6, %8 : vector<8x128xf32>
    %cst_7 = arith.constant 0.000000e+00 : f32
    %10 = vector.broadcast %cst_7 : f32 to vector<8x128xf32>
    %11 = arith.maximumf %9, %10 : vector<8x128xf32>
    %12 = arith.truncf %11 : vector<8x128xf32> to vector<8x128xbf16>
    %c0_8 = arith.constant 0 : index
    %c0_9 = arith.constant 0 : index
    %13 = vector.load %arg4[%c0_8, %c0_9] : memref<128x128xbf16, #tpu.memory_space<vmem>>, vector<128x128xbf16>
    %cst_10 = arith.constant dense<0.000000e+00> : vector<8x128xf32>
    %14 = tpu.matmul %12, %13, %cst_10 {dimension_numbers = #tpu.dot_dimension_numbers<[1], [0], [0], [1], [0, 0, 1, 1], [], []>} : vector<8x128xbf16>, vector<128x128xbf16>, vector<8x128xf32> -> vector<8x128xf32>
    %15 = arith.addf %4, %14 : vector<8x128xf32>
    %16 = arith.truncf %15 : vector<8x128xf32> to vector<8x128xbf16>
    %c0_11 = arith.constant 0 : index
    %c0_12 = arith.constant 0 : index
    %17 = vector.load %arg6[%c0_11, %c0_12] : memref<128x128xbf16, #tpu.memory_space<vmem>>, vector<128x128xbf16>
    %cst_13 = arith.constant dense<0.000000e+00> : vector<8x128xf32>
    %18 = tpu.matmul %16, %17, %cst_13 {dimension_numbers = #tpu.dot_dimension_numbers<[1], [0], [0], [1], [0, 0, 1, 1], [], []>} : vector<8x128xbf16>, vector<128x128xbf16>, vector<8x128xf32> -> vector<8x128xf32>
    %c0_14 = arith.constant 0 : index
    %c0_15 = arith.constant 0 : index
    %19 = vector.load %arg7[%c0_14, %c0_15] : memref<1x128xf32, #tpu.memory_space<vmem>>, vector<1x128xf32>
    %20 = vector.broadcast %19 : vector<1x128xf32> to vector<8x128xf32>
    %21 = arith.addf %18, %20 : vector<8x128xf32>
    %c0_16 = arith.constant 0 : index
    %c0_17 = arith.constant 0 : index
    %22 = vector.load %arg8[%c0_16, %c0_17] : memref<8x128xf32, #tpu.memory_space<vmem>>, vector<8x128xf32>
    tpu.vector_store %arg8[%c0_16, %c0_17], %21 {strides = array<i32>} : memref<8x128xf32, #tpu.memory_space<vmem>>, vector<8x128xf32>,
    return
  }
  func.func @transform_0(%arg0: i32) -> (i32, i32) {
    %c0_i32 = arith.constant 0 : i32
    %c0_i32_0 = arith.constant 0 : i32
    return %arg0, %c0_i32 : i32, i32
  }
  func.func @transform_1(%arg0: i32) -> (i32, i32) {
    %c0_i32 = arith.constant 0 : i32
    %c0_i32_0 = arith.constant 0 : i32
    %c0_i32_1 = arith.constant 0 : i32
    return %c0_i32, %c0_i32_0 : i32, i32
  }
  func.func @transform_2(%arg0: i32) -> (i32, i32) {
    %c0_i32 = arith.constant 0 : i32
    %c0_i32_0 = arith.constant 0 : i32
    %c0_i32_1 = arith.constant 0 : i32
    return %c0_i32, %c0_i32_0 : i32, i32
  }
  func.func @transform_3(%arg0: i32) -> (i32, i32) {
    %c0_i32 = arith.constant 0 : i32
    %c0_i32_0 = arith.constant 0 : i32
    %c0_i32_1 = arith.constant 0 : i32
    return %c0_i32, %c0_i32_0 : i32, i32
  }
  func.func @transform_4(%arg0: i32) -> (i32, i32) {
    %c0_i32 = arith.constant 0 : i32
    %c0_i32_0 = arith.constant 0 : i32
    %c0_i32_1 = arith.constant 0 : i32
    return %c0_i32, %c0_i32_0 : i32, i32
  }
  func.func @transform_5(%arg0: i32) -> (i32, i32) {
    %c0_i32 = arith.constant 0 : i32
    %c0_i32_0 = arith.constant 0 : i32
    %c0_i32_1 = arith.constant 0 : i32
    return %c0_i32, %c0_i32_0 : i32, i32
  }
  func.func @transform_6(%arg0: i32) -> (i32, i32) {
    %c0_i32 = arith.constant 0 : i32
    %c0_i32_0 = arith.constant 0 : i32
    %c0_i32_1 = arith.constant 0 : i32
    return %c0_i32, %c0_i32_0 : i32, i32
  }
  func.func @transform_7(%arg0: i32) -> (i32, i32) {
    %c0_i32 = arith.constant 0 : i32
    %c0_i32_0 = arith.constant 0 : i32
    return %arg0, %c0_i32 : i32, i32
  }
}

</mosaic_0001>

<bundles_post_ra>
// kernel: tpu_custom_call.1
= control target key start
LH: loop header
LB: loop body
LE: loop exit
PB: predicated region body
PF: predicated region fallthrough
CT: control target
= control target key end

     0   :  { %12 = vsyncpa [#allocation3], 0  ;;  %s687_s0 = inlined_call_operand.hbm [shape: f32[8,128], index: 0, kind: input, shape index: {}]   ;;  %s688_s1 = inlined_call_operand.hbm [shape: bf16[128,128], index: 1, kind: input, shape index: {}]   ;;  %s689_s2 = inlined_call_operand.vmem [shape: f32[1,128], index: 2, kind: input, shape index: {}]   ;;  %s690_s3 = inlined_call_operand.hbm [shape: bf16[128,128], index: 3, kind: input, shape index: {}]   ;;  %s691_s4 = inlined_call_operand.vmem [shape: f32[1,128], index: 4, kind: input, shape index: {}]   ;;  %s692_s5 = inlined_call_operand.hbm [shape: bf16[128,128], index: 5, kind: input, shape index: {}]   ;;  %s693_s6 = inlined_call_operand.vmem [shape: f32[1,128], index: 6, kind: input, shape index: {}]   ;;  %s694_s7 = inlined_call_operand.hbm [shape: f32[8,128], index: 7, kind: output, shape index: {}]  }
   0x1   :  { %13 = vsyncpa [#allocation6], 0 }
   0x2   :  { %14 = vsyncpa [#allocation9], 0  ;;  %s31_s26 = sshll.u32 %s688_s1, 4  ;;  %s32_s26 = int_to_ptr.hbm [resolvable:$true] %s31_s26 }
   0x3   :  { %15 = vsyncpa [#allocation4], 0  ;;  %s616_s27 = smov [#allocation5]   ;;  %s21_s8 = sshll.u32 %s687_s0, 4  ;;  %s22_s8 = int_to_ptr.hbm [resolvable:$true] %s21_s8 }
   0x4   :  { %s33_s28 = sshll.u32 %s616_s27, 4  ;;  %s617_s9 = smov 64   ;;  %s34_s28 = int_to_ptr.vmem [resolvable:$true] %s33_s28 }
   0x5   :  { %s618_s10 = smov 4   ;;  %s619_s11 = smov [#allocation2]  }
   0x6   :  { %39 = dma.hbm_to_vmem [thread:$0]  %s32_s26, 1024, %s34_s28, [#allocation6], %s617_s9, %s617_s9, %s618_s10  }
   0x7   :  { %s23_s12 = sshll.u32 %s619_s11, 4  ;;  %s46_s15 = sshll.u32 %s690_s3, 4  ;;  %s24_s12 = int_to_ptr.vmem [resolvable:$true] %s23_s12  ;;  %s47_s15 = int_to_ptr.hbm [resolvable:$true] %s46_s15 }
   0x8   :  { %26 = dma.hbm_to_vmem [thread:$0]  %s22_s8, 128, %s24_s12, [#allocation3]  }
   0x9   :  { %s61_s17 = sshll.u32 %s692_s5, 4  ;;  %s620_s18 = smov [#allocation7]   ;;  %s62_s17 = int_to_ptr.hbm [resolvable:$true] %s61_s17 }
   0xa   :  { %s48_s19 = sshll.u32 %s620_s18, 4  ;;  %s621_s0 = smov [#allocation8]   ;;  %s49_s19 = int_to_ptr.vmem [resolvable:$true] %s48_s19 }
   0xb   :  { %54 = dma.hbm_to_vmem [thread:$0]  %s47_s15, 1024, %s49_s19, [#allocation6], %s617_s9, %s617_s9, %s618_s10  }
   0xc   :  { %s63_s20 = sshll.u32 %s621_s0, 4  ;;  %s64_s20 = int_to_ptr.vmem [resolvable:$true] %s63_s20 }
   0xd   :  { %69 = dma.hbm_to_vmem [thread:$0]  %s62_s17, 1024, %s64_s20, [#allocation9], %s617_s9, %s617_s9, %s618_s10  }
   0xe   :  { %608 = dma.done.wait [#allocation3], 128  }
   0xf   :  { %609 = vsyncadd [#allocation3], 4294967168 }
  0x10   :  { %610 = dma.done.wait [#allocation6], 2048  }
  0x11   :  { %611 = vsyncadd [#allocation6], 4294965248 }
  0x12   :  { %612 = dma.done.wait [#allocation9], 1024  }
  0x13   :  { %613 = vsyncadd [#allocation9], 4294966272  ;;  %v461_v0 = vld [vmem:[#allocation5 + $0x38] sm:$0xff]  ;;  %v460_v1 = vld [vmem:[#allocation5 + $0x30] sm:$0xff]  ;;  %s622_s24 = smov [#allocation10]   ;;  %s346_s28 = sshll.u32 %s694_s7, 4  ;;  %s347_s28 = int_to_ptr.hbm [resolvable:$true] %s346_s28 }
  0x14   :  { %163 = vmatpush.bf16.msra.mxu0 %v461_v0  ;;  %v469_v2 = vld [vmem:[#allocation7 + $0x38] sm:$0xff]  ;;  %v468_v3 = vld [vmem:[#allocation7 + $0x30] sm:$0xff]  ;;  %v459_v4 = vld [vmem:[#allocation5 + $0x28] sm:$0xff]  ;;  %s344_s25 = sshll.u32 %s622_s24, 4  ;;  %s345_s25 = int_to_ptr.vmem [resolvable:$true] %s344_s25 }
  0x15   :  { %242 = vmatpush.bf16.msra.mxu1 %v469_v2  ;;  %v467_v5 = vld [vmem:[#allocation7 + $0x28] sm:$0xff]  ;;  %v458_v6 = vld [vmem:[#allocation5 + $0x20] sm:$0xff]  ;;  %v457_v8 = vld [vmem:[#allocation5 + $0x18] sm:$0xff] }
  0x16   :  { %v466_v7 = vld [vmem:[#allocation7 + $0x20] sm:$0xff]  ;;  %v465_v9 = vld [vmem:[#allocation7 + $0x18] sm:$0xff]  ;;  %v456_v10 = vld [vmem:[#allocation5 + $0x10] sm:$0xff] }
  0x17   :  { %v464_v11 = vld [vmem:[#allocation7 + $0x10] sm:$0xff]  ;;  %v455_v12 = vld [vmem:[#allocation5 + $0x8] sm:$0xff]  ;;  %v454_v13 = vld [vmem:[#allocation5] sm:$0xff] }
  0x18   :  { %164 = vmatpush.bf16.msra.mxu0 %v460_v1  ;;  %v88_v14 = vld [vmem:[#allocation2] sm:$0xff]  ;;  %v463_v16 = vld [vmem:[#allocation7 + $0x8] sm:$0xff]  ;;  %v462_v17 = vld [vmem:[#allocation7] sm:$0xff] }
  0x19   :  { %243 = vmatpush.bf16.msra.mxu1 %v468_v3  ;;  %v89_v15 = vpack.c.bf16 %v88_v14, %v88_v14  ;;  %v477_v18 = vld [vmem:[#allocation8 + $0x38] sm:$0xff]  ;;  %v476_v19 = vld [vmem:[#allocation8 + $0x30] sm:$0xff]  ;;  %v475_v20 = vld [vmem:[#allocation8 + $0x28] sm:$0xff] }
  0x1a   :  { %325 = vmatpush.bf16.msra.mxu2 %v477_v18  ;;  %v474_v21 = vld [vmem:[#allocation8 + $0x20] sm:$0xff]  ;;  %v473_v22 = vld [vmem:[#allocation8 + $0x18] sm:$0xff]  ;;  %v472_v23 = vld [vmem:[#allocation8 + $0x10] sm:$0xff] }
  0x1b   :  { %v485_v24 = vld [vmem:[%s689_s2] ss:$0 sm:$0xff]  ;;  %v471_v25 = vld [vmem:[#allocation8 + $0x8] sm:$0xff]  ;;  %v470_v31 = vld [vmem:[#allocation8] sm:$0xff] }
  0x1c   :  { %165 = vmatpush.bf16.msra.mxu0 %v459_v4  ;;  %v486_v32 = vld [vmem:[%s691_s4] ss:$0 sm:$0xff] }
  0x1d   :  { %244 = vmatpush.bf16.msra.mxu1 %v467_v5  ;;  %v94_v33 = vadd.f32 %v486_v32, %v88_v14  ;;  %v487_v38 = vld [vmem:[%s693_s6] ss:$0 sm:$0xff] }
  0x1e   :  { %326 = vmatpush.bf16.msra.mxu2 %v476_v19 }
  0x20   :  { %166 = vmatpush.bf16.msra.mxu0 %v458_v6 }
  0x21   :  { %245 = vmatpush.bf16.msra.mxu1 %v466_v7 }
  0x22   :  { %327 = vmatpush.bf16.msra.mxu2 %v475_v20 }
  0x24   :  { %167 = vmatpush.bf16.msra.mxu0 %v457_v8 }
  0x25   :  { %246 = vmatpush.bf16.msra.mxu1 %v465_v9 }
  0x26   :  { %328 = vmatpush.bf16.msra.mxu2 %v474_v21 }
  0x28   :  { %168 = vmatpush.bf16.msra.mxu0 %v456_v10 }
  0x29   :  { %247 = vmatpush.bf16.msra.mxu1 %v464_v11 }
  0x2a   :  { %329 = vmatpush.bf16.msra.mxu2 %v473_v22 }
  0x2c   :  { %169 = vmatpush.bf16.msra.mxu0 %v455_v12 }
  0x2d   :  { %248 = vmatpush.bf16.msra.mxu1 %v463_v16 }
  0x2e   :  { %330 = vmatpush.bf16.msra.mxu2 %v472_v23 }
  0x30   :  { %170 = vmatpush.bf16.msra.mxu0 %v454_v13 }
  0x31   :  { %249 = vmatpush.bf16.msra.mxu1 %v462_v17 }
  0x32   :  { %331 = vmatpush.bf16.msra.mxu2 %v471_v25 }
  0x33   :  { %171 = vmatmul.bf16.vlgmr.msra.gmra.mxu0 %v89_v15 }
  0x36   :  { %332 = vmatpush.bf16.msra.mxu2 %v470_v31 }
  0xb0   :  { %v172_v26 = vpop.f32.mrf.mxu0 }
  0xb1   :  { %v173_v27 = vadd.f32 %v485_v24, %v172_v26 }
  0xb3   :  { %v176_v28 = vmax.f32 %v173_v27, 0.0 }
  0xb5   :  { %v177_v29 = vpack.c.bf16 %v176_v28, %v176_v28 }
  0xb7   :  { %250 = vmatmul.bf16.vlgmr.msra.gmra.mxu1 %v177_v29 }
  0xb8   :  { %v174_v30 = vpop.f32.mrf.mxu0 }
 0x134   :  { %v251_v34 = vpop.f32.mrf.mxu1 }
 0x135   :  { %v255_v35 = vadd.f32 %v251_v34, %v94_v33 }
 0x137   :  { %v256_v36 = vpack.c.bf16 %v255_v35, %v255_v35 }
 0x139   :  { %333 = vmatmul.bf16.vlgmr.msra.gmra.mxu2 %v256_v36 }
 0x13c   :  { %v253_v37 = vpop.f32.mrf.mxu1 }
 0x1bc   :  { %v334_v39 = vpop.f32.mrf.mxu2 }
 0x1bd   :  { %v335_v40 = vadd.f32 %v487_v38, %v334_v39 }
 0x1bf   :  { %338 = vst [vmem:[#allocation10] sm:$0xff] %v335_v40 }
 0x1c0   :  { %349 = dma.vmem_to_hbm [thread:$0]  %s345_s25, 128, %s347_s28, [#allocation4]  }
 0x1c4   :  { %v336_v41 = vpop.f32.mrf.mxu2 }
 0x1c5   :  { %614 = dma.done.wait [#allocation4], 128  }
 0x1c6   :  { %615 = vsyncadd [#allocation4], 4294967168 }
 0x1c7   :  { %354 = vsyncpa [#allocation3], 1 }
 0x1c8   :  { %355 = vsyncpa [#allocation6], 1 }
 0x1c9   :  { %356 = vsyncpa [#allocation9], 1 }
 0x1ca   :  { %357 = vsyncpa [#allocation4], 1 }

</bundles_post_ra>
